<compile_context>
chip_gen: v7x
topology: tpu7x:2x2x1
jax: 0.10.0
libtpu: 0.0.40
codegen_flags: <defaults>
</compile_context>

<pallas_src>
import functools

import jax
import jax.numpy as jnp
from jax import lax
from jax.experimental import pallas as pl
from jax.experimental.pallas import tpu as pltpu


# ----------------------------------------------------------------------------
# Fused per-level kernel body
# ----------------------------------------------------------------------------
def _fused_level_body(H, W, Hp, Wp, x_ref, prev_ref, wa_ref, ba_ref, ws_ref,
                      bs_ref, o_ref, fpad_ref):
    # x_ref:    (1, H*W, Cin)       current backbone level (flattened spatial)
    # prev_ref: (1, Hp*Wp, C)|None  previous (coarser) FPN output, flattened
    # wa_ref:   (Cin, C)            1x1 conv weight      ba_ref: (1, C) bias
    # ws_ref:   (9, C)              3x3 depthwise taps   bs_ref: (1, C) bias
    # o_ref:    (1, H*W, C)
    # fpad_ref: (H*W + 2*(W+1), C)  flat scratch giving the "same" zero padding
    f32 = jnp.float32
    HW = H * W
    PAD = W + 1
    C = o_ref.shape[-1]

    # -- 1x1 adaptive conv: one MXU matmul over every pixel of this level ----
    # TODO(synk): cast matmul inputs to bf16 (keep f32 accumulation) on
    # v6e/v7x; kept f32 here to hold the 1e-4 check against the f32 reference.
    f = jnp.dot(x_ref[0], wa_ref[...], preferred_element_type=f32)
    f = f + ba_ref[...]                                        # (HW, C)

    # -- zero the two pad strips (h = -1 / h = H halo rows, (W+1) rows each) -
    fpad_ref[pl.ds(0, PAD), :] = jnp.zeros((PAD, C), f32)
    fpad_ref[pl.ds(PAD + HW, PAD), :] = jnp.zeros((PAD, C), f32)

    # -- single bulk store of the pointwise result into the scratch interior -
    fpad_ref[pl.ds(PAD, HW), :] = f

    # -- nearest x2 upsample of the previous level, fused in VMEM ------------
    if prev_ref is not None:
        r = lax.broadcasted_iota(jnp.int32, (2 * W, Wp), 0)
        j = lax.broadcasted_iota(jnp.int32, (2 * W, Wp), 1)
        # expand[r, j] == 1  iff  j == (r mod W) // 2 : one MXU matmul per
        # coarse row yields BOTH replicated, width-upsampled output rows.
        expand = ((lax.rem(r, jnp.int32(W)) // 2) == j).astype(f32)  # (2W, Wp)
        for hp in range(Hp):
            prev_row = prev_ref[0, pl.ds(hp * Wp, Wp), :]            # (Wp, C)
            up2 = jnp.dot(expand, prev_row,
                          preferred_element_type=f32)                # (2W, C)
            fpad_ref[pl.ds(PAD + 2 * hp * W, 2 * W), :] += up2

    # -- 3x3 depthwise smooth conv: 9 shifted MACs out of the flat scratch ---
    col = lax.broadcasted_iota(jnp.int32, (HW, 1), 0)
    wcol = lax.rem(col, jnp.int32(W))
    m_l = (wcol > 0).astype(f32)        # kills the w = -1 wrap-around column
    m_r = (wcol < W - 1).astype(f32)    # kills the w = W  wrap-around column
    acc = jnp.broadcast_to(bs_ref[...], (HW, C)).astype(f32)
    for dh in range(3):
        for dw in range(3):
            start = PAD + (dh - 1) * W + (dw - 1)
            v = fpad_ref[pl.ds(start, HW), :]
            term = v * ws_ref[dh * 3 + dw, :]
            if dw == 0:
                term = term * m_l
            elif dw == 2:
                term = term * m_r
            acc = acc + term
    o_ref[0] = acc.astype(o_ref.dtype)


def _fpn_top_kernel(H, W, x_ref, wa_ref, ba_ref, ws_ref, bs_ref, o_ref,
                    fpad_ref):
    _fused_level_body(H, W, 0, 0, x_ref, None, wa_ref, ba_ref, ws_ref, bs_ref,
                      o_ref, fpad_ref)


def _fpn_up_kernel(H, W, Hp, Wp, x_ref, prev_ref, wa_ref, ba_ref, ws_ref,
                   bs_ref, o_ref, fpad_ref):
    _fused_level_body(H, W, Hp, Wp, x_ref, prev_ref, wa_ref, ba_ref, ws_ref,
                      bs_ref, o_ref, fpad_ref)


# ----------------------------------------------------------------------------
# Wrapper: one fused pallas_call per pyramid level
# ----------------------------------------------------------------------------
def fpn_level(x_nhwc, prev_flat, prev_hw, wa_ic, ba, ws9, bs):
    N, H, W, Cin = x_nhwc.shape
    C = wa_ic.shape[1]
    HW = H * W
    x2 = x_nhwc.reshape(N, HW, Cin)    # contiguous reshape (no data movement)

    in_arrays = [x2]
    in_specs = [pl.BlockSpec((1, HW, Cin), lambda n: (n, 0, 0))]
    flops = 2 * N * HW * Cin * C + 2 * N * HW * 9 * C
    bytes_accessed = (x2.size + N * HW * C + wa_ic.size + ba.size
                      + ws9.size + bs.size) * 4

    if prev_flat is None:
        kernel = functools.partial(_fpn_top_kernel, H, W)
    else:
        Hp, Wp = prev_hw
        assert H == 2 * Hp and W == 2 * Wp, "FPN expects exact x2 pyramid steps"
        kernel = functools.partial(_fpn_up_kernel, H, W, Hp, Wp)
        in_arrays.append(prev_flat)
        in_specs.append(pl.BlockSpec((1, Hp * Wp, C), lambda n: (n, 0, 0)))
        flops += 2 * N * Hp * (2 * W) * Wp * C
        bytes_accessed += prev_flat.size * 4

    in_arrays += [wa_ic, ba.reshape(1, C), ws9, bs.reshape(1, C)]
    in_specs += [
        pl.BlockSpec((Cin, C), lambda n: (0, 0)),
        pl.BlockSpec((1, C), lambda n: (0, 0)),
        pl.BlockSpec((9, C), lambda n: (0, 0)),
        pl.BlockSpec((1, C), lambda n: (0, 0)),
    ]

    # TODO(synk): for production sizes (e.g. 200x200x256 levels) tile the
    # spatial dim (grid=(N, cdiv(H, TH)) with a 1-row halo on the pointwise
    # feature) so blocks stay inside v7x's 64 MiB VMEM; unnecessary at these
    # test shapes.
    out = pl.pallas_call(
        kernel,
        out_shape=jax.ShapeDtypeStruct((N, HW, C), jnp.float32),
        grid=(N,),
        in_specs=in_specs,
        out_specs=pl.BlockSpec((1, HW, C), lambda n: (n, 0, 0)),
        scratch_shapes=[pltpu.VMEM((HW + 2 * (W + 1), C), jnp.float32)],
        compiler_params=pltpu.CompilerParams(
            dimension_semantics=("parallel",)),
        cost_estimate=pl.CostEstimate(flops=flops, transcendentals=0,
                                      bytes_accessed=bytes_accessed),
    )(*in_arrays)
    return out          # (N, H*W, C) — stays flattened between levels


# ----------------------------------------------------------------------------
# FPN module (Pallas)
# ----------------------------------------------------------------------------
class FPNPallas:
    def __init__(self, dim_ins, dim_out=256, key=jax.random.PRNGKey(0)):
        self.dim_out = dim_out
        self.params = []            # kernel-layout params (per processed level)
        self.torch_params = []      # torch-layout params, for the reference
        for in_chns in list(reversed(dim_ins)):
            key, k1, k2, k3, k4 = jax.random.split(key, 5)
            # adaptive: Conv2d(in_chns, dim_out, 1)
            wa_t = 0.1 * jax.random.normal(k1, (dim_out, in_chns, 1, 1), jnp.float32)
            ba = 0.1 * jax.random.normal(k2, (dim_out,), jnp.float32)
            # smooth: Conv2d(dim_out, dim_out, 3, padding=1, groups=dim_out)
            ws_t = 0.1 * jax.random.normal(k3, (dim_out, 1, 3, 3), jnp.float32)
            bs = 0.1 * jax.random.normal(k4, (dim_out,), jnp.float32)
            wa_ic = jnp.transpose(wa_t[:, :, 0, 0], (1, 0))          # (Cin, C)
            ws9 = jnp.transpose(ws_t[:, 0, :, :], (1, 2, 0)).reshape(9, dim_out)
            self.params.append((wa_ic, ba, ws9, bs))
            self.torch_params.append((wa_t, ba, ws_t, bs))

    def __call__(self, xs_nchw):
        feats = []        # (flat NHWC feature, (H, W)) per processed level
        last, last_hw = None, None
        for i, x in enumerate(reversed(xs_nchw)):
            wa_ic, ba, ws9, bs = self.params[i]
            x_nhwc = jnp.transpose(x, (0, 2, 3, 1))
            N, H, W, _ = x_nhwc.shape
            f = fpn_level(x_nhwc, last, last_hw, wa_ic, ba, ws9, bs)
            last, last_hw = f, (H, W)
            feats.append((f, (H, W)))
        # back to NCHW and original (fine -> coarse) order, like PyTorch
        outs = []
        for f, (H, W) in feats:
            N = f.shape[0]
            outs.append(jnp.transpose(f.reshape(N, H, W, self.dim_out),
                                      (0, 3, 1, 2)))
        return tuple(reversed(outs))


# ----------------------------------------------------------------------------
# Pure-JAX reference (NCHW, lax convolutions) for verification.
# ----------------------------------------------------------------------------
def fpn_reference(xs_nchw, torch_params, dim_out):
    feats = []
    last = None
    dn = ("NCHW", "OIHW", "NCHW")
    for i, x in enumerate(reversed(xs_nchw)):
        wa_t, ba, ws_t, bs = torch_params[i]
        f = jax.lax.conv_general_dilated(x, wa_t, (1, 1), "VALID",
                                         dimension_numbers=dn)
        f = f + ba[None, :, None, None]
        if last is not None:
            up = jnp.repeat(jnp.repeat(last, 2, axis=2), 2, axis=3)
            f = f + up
        f = jax.lax.conv_general_dilated(f, ws_t, (1, 1), ((1, 1), (1, 1)),
                                         dimension_numbers=dn,
                                         feature_group_count=dim_out)
        f = f + bs[None, :, None, None]
        last = f
        feats.append(f)
    return tuple(reversed(feats))


if __name__ == "__main__":
    key = jax.random.PRNGKey(0)
    dim_ins = [4, 8, 16]
    dim_out = 32
    # Pyramid inputs (NCHW, like PyTorch): spatial halves as channels double.
    key, kx0, kx1, kx2 = jax.random.split(key, 4)
    x0 = jax.random.normal(kx0, (2, 4, 16, 16), jnp.float32)
    x1 = jax.random.normal(kx1, (2, 8, 8, 8), jnp.float32)
    x2 = jax.random.normal(kx2, (2, 16, 4, 4), jnp.float32)
    xs = [x0, x1, x2]

    fpn = FPNPallas(dim_ins, dim_out=dim_out, key=jax.random.PRNGKey(42))

    outs = fpn(xs)
    outs = jax.block_until_ready(outs)

    refs = jax.block_until_ready(fpn_reference(xs, fpn.torch_params, dim_out))
    for o, r in zip(outs, refs):
        assert o.shape == r.shape, (o.shape, r.shape)
        assert jnp.allclose(o, r, atol=1e-4, rtol=1e-4), \
            float(jnp.max(jnp.abs(o - r)))

    print("KERNEL_OK")
</pallas_src>

<mosaic_0001>
module attributes {stable_mosaic.version = 11 : i64} {
  func.func @_fpn_top_kernel(%arg0: i32, %arg1: memref<1x16x16xf32, #tpu.memory_space<vmem>>, %arg2: memref<16x32xf32, #tpu.memory_space<vmem>>, %arg3: memref<1x32xf32, #tpu.memory_space<vmem>>, %arg4: memref<9x32xf32, #tpu.memory_space<vmem>>, %arg5: memref<1x32xf32, #tpu.memory_space<vmem>>, %arg6: memref<1x16x32xf32, #tpu.memory_space<vmem>>, %arg7: memref<26x32xf32, #tpu.memory_space<vmem>>) attributes {dimension_semantics = [#tpu.dimension_semantics<parallel>], iteration_bounds = array<i64: 2>, scalar_prefetch = 0 : i64, scratch_operands = 1 : i64, tpu.core_type = #tpu.core_type<tc>, window_params = [{transform_indices = @transform_0, window_bounds = array<i64: 1, 16, 16>}, {pipeline_mode = #tpu.pipeline_mode<synchronous>, transform_indices = @transform_1, window_bounds = array<i64: 16, 32>}, {pipeline_mode = #tpu.pipeline_mode<synchronous>, transform_indices = @transform_2, window_bounds = array<i64: 1, 32>}, {pipeline_mode = #tpu.pipeline_mode<synchronous>, transform_indices = @transform_3, window_bounds = array<i64: 9, 32>}, {pipeline_mode = #tpu.pipeline_mode<synchronous>, transform_indices = @transform_4, window_bounds = array<i64: 1, 32>}, {transform_indices = @transform_5, window_bounds = array<i64: 1, 16, 32>}]} {
    %c0 = arith.constant 0 : index
    %c0_0 = arith.constant 0 : index
    %c0_1 = arith.constant 0 : index
    %0 = vector.load %arg1[%c0, %c0_0, %c0_1] : memref<1x16x16xf32, #tpu.memory_space<vmem>>, vector<1x16x16xf32>
    %1 = vector.shape_cast %0 : vector<1x16x16xf32> to vector<16x16xf32>
    %c0_2 = arith.constant 0 : index
    %c0_3 = arith.constant 0 : index
    %2 = vector.load %arg2[%c0_2, %c0_3] : memref<16x32xf32, #tpu.memory_space<vmem>>, vector<16x32xf32>
    %cst = arith.constant dense<0.000000e+00> : vector<16x32xf32>
    %3 = tpu.matmul %1, %2, %cst {dimension_numbers = #tpu.dot_dimension_numbers<[1], [0], [0], [1], [0, 0, 1, 1], [], []>} : vector<16x16xf32>, vector<16x32xf32>, vector<16x32xf32> -> vector<16x32xf32>
    %c0_4 = arith.constant 0 : index
    %c0_5 = arith.constant 0 : index
    %4 = vector.load %arg3[%c0_4, %c0_5] : memref<1x32xf32, #tpu.memory_space<vmem>>, vector<1x32xf32>
    %5 = vector.broadcast %4 : vector<1x32xf32> to vector<16x32xf32>
    %6 = arith.addf %3, %5 : vector<16x32xf32>
    %cst_6 = arith.constant 0.000000e+00 : f32
    %7 = vector.broadcast %cst_6 : f32 to vector<5x32xf32>
    %c0_7 = arith.constant 0 : index
    %c0_8 = arith.constant 0 : index
    %8 = vector.load %arg7[%c0_7, %c0_8] : memref<26x32xf32, #tpu.memory_space<vmem>>, vector<5x32xf32>
    tpu.vector_store %arg7[%c0_7, %c0_8], %7 {strides = array<i32>} : memref<26x32xf32, #tpu.memory_space<vmem>>, vector<5x32xf32>,
    %cst_9 = arith.constant 0.000000e+00 : f32
    %9 = vector.broadcast %cst_9 : f32 to vector<5x32xf32>
    %c21 = arith.constant 21 : index
    %c0_10 = arith.constant 0 : index
    %10 = vector.load %arg7[%c21, %c0_10] : memref<26x32xf32, #tpu.memory_space<vmem>>, vector<5x32xf32>
    tpu.vector_store %arg7[%c21, %c0_10], %9 {strides = array<i32>} : memref<26x32xf32, #tpu.memory_space<vmem>>, vector<5x32xf32>,
    %c5 = arith.constant 5 : index
    %c0_11 = arith.constant 0 : index
    %11 = vector.load %arg7[%c5, %c0_11] : memref<26x32xf32, #tpu.memory_space<vmem>>, vector<16x32xf32>
    tpu.vector_store %arg7[%c5, %c0_11], %6 {strides = array<i32>} : memref<26x32xf32, #tpu.memory_space<vmem>>, vector<16x32xf32>,
    %12 = tpu.iota {dimensions = array<i32: 0>} : vector<16x1xi32>
    %c4_i32 = arith.constant 4 : i32
    %13 = vector.broadcast %c4_i32 : i32 to vector<16x1xi32>
    %14 = arith.remsi %12, %13 : vector<16x1xi32>
    %c0_i32 = arith.constant 0 : i32
    %15 = vector.broadcast %c0_i32 : i32 to vector<16x1xi32>
    %16 = arith.cmpi sgt, %14, %15 : vector<16x1xi32>
    %17 = arith.extui %16 : vector<16x1xi1> to vector<16x1xi32>
    %18 = arith.sitofp %17 : vector<16x1xi32> to vector<16x1xf32>
    %c3_i32 = arith.constant 3 : i32
    %19 = vector.broadcast %c3_i32 : i32 to vector<16x1xi32>
    %20 = arith.cmpi slt, %14, %19 : vector<16x1xi32>
    %21 = arith.extui %20 : vector<16x1xi1> to vector<16x1xi32>
    %22 = arith.sitofp %21 : vector<16x1xi32> to vector<16x1xf32>
    %c0_12 = arith.constant 0 : index
    %c0_13 = arith.constant 0 : index
    %23 = vector.load %arg5[%c0_12, %c0_13] : memref<1x32xf32, #tpu.memory_space<vmem>>, vector<1x32xf32>
    %24 = vector.shape_cast %23 : vector<1x32xf32> to vector<1x32xf32>
    %25 = vector.broadcast %24 : vector<1x32xf32> to vector<16x32xf32>
    %c0_14 = arith.constant 0 : index
    %c0_15 = arith.constant 0 : index
    %26 = vector.load %arg7[%c0_14, %c0_15] : memref<26x32xf32, #tpu.memory_space<vmem>>, vector<16x32xf32>
    %c0_16 = arith.constant 0 : index
    %c0_17 = arith.constant 0 : index
    %27 = vector.load %arg4[%c0_16, %c0_17] : memref<9x32xf32, #tpu.memory_space<vmem>>, vector<1x32xf32>
    %28 = vector.shape_cast %27 : vector<1x32xf32> to vector<32xf32>
    %29 = vector.shape_cast %28 : vector<32xf32> to vector<1x32xf32>
    %30 = vector.broadcast %29 : vector<1x32xf32> to vector<16x32xf32>
    %31 = arith.mulf %26, %30 : vector<16x32xf32>
    %32 = vector.broadcast %18 : vector<16x1xf32> to vector<16x32xf32>
    %33 = arith.mulf %31, %32 : vector<16x32xf32>
    %34 = arith.addf %25, %33 : vector<16x32xf32>
    %c1 = arith.constant 1 : index
    %c0_18 = arith.constant 0 : index
    %35 = vector.load %arg7[%c1, %c0_18] : memref<26x32xf32, #tpu.memory_space<vmem>>, vector<16x32xf32>
    %c1_19 = arith.constant 1 : index
    %c0_20 = arith.constant 0 : index
    %36 = vector.load %arg4[%c1_19, %c0_20] : memref<9x32xf32, #tpu.memory_space<vmem>>, vector<1x32xf32>
    %37 = vector.shape_cast %36 : vector<1x32xf32> to vector<32xf32>
    %38 = vector.shape_cast %37 : vector<32xf32> to vector<1x32xf32>
    %39 = vector.broadcast %38 : vector<1x32xf32> to vector<16x32xf32>
    %40 = arith.mulf %35, %39 : vector<16x32xf32>
    %41 = arith.addf %34, %40 : vector<16x32xf32>
    %c2 = arith.constant 2 : index
    %c0_21 = arith.constant 0 : index
    %42 = vector.load %arg7[%c2, %c0_21] : memref<26x32xf32, #tpu.memory_space<vmem>>, vector<16x32xf32>
    %c2_22 = arith.constant 2 : index
    %c0_23 = arith.constant 0 : index
    %43 = vector.load %arg4[%c2_22, %c0_23] : memref<9x32xf32, #tpu.memory_space<vmem>>, vector<1x32xf32>
    %44 = vector.shape_cast %43 : vector<1x32xf32> to vector<32xf32>
    %45 = vector.shape_cast %44 : vector<32xf32> to vector<1x32xf32>
    %46 = vector.broadcast %45 : vector<1x32xf32> to vector<16x32xf32>
    %47 = arith.mulf %42, %46 : vector<16x32xf32>
    %48 = vector.broadcast %22 : vector<16x1xf32> to vector<16x32xf32>
    %49 = arith.mulf %47, %48 : vector<16x32xf32>
    %50 = arith.addf %41, %49 : vector<16x32xf32>
    %c4 = arith.constant 4 : index
    %c0_24 = arith.constant 0 : index
    %51 = vector.load %arg7[%c4, %c0_24] : memref<26x32xf32, #tpu.memory_space<vmem>>, vector<16x32xf32>
    %c3 = arith.constant 3 : index
    %c0_25 = arith.constant 0 : index
    %52 = vector.load %arg4[%c3, %c0_25] : memref<9x32xf32, #tpu.memory_space<vmem>>, vector<1x32xf32>
    %53 = vector.shape_cast %52 : vector<1x32xf32> to vector<32xf32>
    %54 = vector.shape_cast %53 : vector<32xf32> to vector<1x32xf32>
    %55 = vector.broadcast %54 : vector<1x32xf32> to vector<16x32xf32>
    %56 = arith.mulf %51, %55 : vector<16x32xf32>
    %57 = vector.broadcast %18 : vector<16x1xf32> to vector<16x32xf32>
    %58 = arith.mulf %56, %57 : vector<16x32xf32>
    %59 = arith.addf %50, %58 : vector<16x32xf32>
    %c5_26 = arith.constant 5 : index
    %c0_27 = arith.constant 0 : index
    %60 = vector.load %arg7[%c5_26, %c0_27] : memref<26x32xf32, #tpu.memory_space<vmem>>, vector<16x32xf32>
    %c4_28 = arith.constant 4 : index
    %c0_29 = arith.constant 0 : index
    %61 = vector.load %arg4[%c4_28, %c0_29] : memref<9x32xf32, #tpu.memory_space<vmem>>, vector<1x32xf32>
    %62 = vector.shape_cast %61 : vector<1x32xf32> to vector<32xf32>
    %63 = vector.shape_cast %62 : vector<32xf32> to vector<1x32xf32>
    %64 = vector.broadcast %63 : vector<1x32xf32> to vector<16x32xf32>
    %65 = arith.mulf %60, %64 : vector<16x32xf32>
    %66 = arith.addf %59, %65 : vector<16x32xf32>
    %c6 = arith.constant 6 : index
    %c0_30 = arith.constant 0 : index
    %67 = vector.load %arg7[%c6, %c0_30] : memref<26x32xf32, #tpu.memory_space<vmem>>, vector<16x32xf32>
    %c5_31 = arith.constant 5 : index
    %c0_32 = arith.constant 0 : index
    %68 = vector.load %arg4[%c5_31, %c0_32] : memref<9x32xf32, #tpu.memory_space<vmem>>, vector<1x32xf32>
    %69 = vector.shape_cast %68 : vector<1x32xf32> to vector<32xf32>
    %70 = vector.shape_cast %69 : vector<32xf32> to vector<1x32xf32>
    %71 = vector.broadcast %70 : vector<1x32xf32> to vector<16x32xf32>
    %72 = arith.mulf %67, %71 : vector<16x32xf32>
    %73 = vector.broadcast %22 : vector<16x1xf32> to vector<16x32xf32>
    %74 = arith.mulf %72, %73 : vector<16x32xf32>
    %75 = arith.addf %66, %74 : vector<16x32xf32>
    %c8 = arith.constant 8 : index
    %c0_33 = arith.constant 0 : index
    %76 = vector.load %arg7[%c8, %c0_33] : memref<26x32xf32, #tpu.memory_space<vmem>>, vector<16x32xf32>
    %c6_34 = arith.constant 6 : index
    %c0_35 = arith.constant 0 : index
    %77 = vector.load %arg4[%c6_34, %c0_35] : memref<9x32xf32, #tpu.memory_space<vmem>>, vector<1x32xf32>
    %78 = vector.shape_cast %77 : vector<1x32xf32> to vector<32xf32>
    %79 = vector.shape_cast %78 : vector<32xf32> to vector<1x32xf32>
    %80 = vector.broadcast %79 : vector<1x32xf32> to vector<16x32xf32>
    %81 = arith.mulf %76, %80 : vector<16x32xf32>
    %82 = vector.broadcast %18 : vector<16x1xf32> to vector<16x32xf32>
    %83 = arith.mulf %81, %82 : vector<16x32xf32>
    %84 = arith.addf %75, %83 : vector<16x32xf32>
    %c9 = arith.constant 9 : index
    %c0_36 = arith.constant 0 : index
    %85 = vector.load %arg7[%c9, %c0_36] : memref<26x32xf32, #tpu.memory_space<vmem>>, vector<16x32xf32>
    %c7 = arith.constant 7 : index
    %c0_37 = arith.constant 0 : index
    %86 = vector.load %arg4[%c7, %c0_37] : memref<9x32xf32, #tpu.memory_space<vmem>>, vector<1x32xf32>
    %87 = vector.shape_cast %86 : vector<1x32xf32> to vector<32xf32>
    %88 = vector.shape_cast %87 : vector<32xf32> to vector<1x32xf32>
    %89 = vector.broadcast %88 : vector<1x32xf32> to vector<16x32xf32>
    %90 = arith.mulf %85, %89 : vector<16x32xf32>
    %91 = arith.addf %84, %90 : vector<16x32xf32>
    %c10 = arith.constant 10 : index
    %c0_38 = arith.constant 0 : index
    %92 = vector.load %arg7[%c10, %c0_38] : memref<26x32xf32, #tpu.memory_space<vmem>>, vector<16x32xf32>
    %c8_39 = arith.constant 8 : index
    %c0_40 = arith.constant 0 : index
    %93 = vector.load %arg4[%c8_39, %c0_40] : memref<9x32xf32, #tpu.memory_space<vmem>>, vector<1x32xf32>
    %94 = vector.shape_cast %93 : vector<1x32xf32> to vector<32xf32>
    %95 = vector.shape_cast %94 : vector<32xf32> to vector<1x32xf32>
    %96 = vector.broadcast %95 : vector<1x32xf32> to vector<16x32xf32>
    %97 = arith.mulf %92, %96 : vector<16x32xf32>
    %98 = vector.broadcast %22 : vector<16x1xf32> to vector<16x32xf32>
    %99 = arith.mulf %97, %98 : vector<16x32xf32>
    %100 = arith.addf %91, %99 : vector<16x32xf32>
    %c0_41 = arith.constant 0 : index
    %c0_42 = arith.constant 0 : index
    %c0_43 = arith.constant 0 : index
    %101 = vector.load %arg6[%c0_41, %c0_42, %c0_43] : memref<1x16x32xf32, #tpu.memory_space<vmem>>, vector<1x16x32xf32>
    %102 = vector.shape_cast %101 : vector<1x16x32xf32> to vector<16x32xf32>
    %103 = vector.shape_cast %100 : vector<16x32xf32> to vector<1x16x32xf32>
    tpu.vector_store %arg6[%c0_41, %c0_42, %c0_43], %103 {strides = array<i32>} : memref<1x16x32xf32, #tpu.memory_space<vmem>>, vector<1x16x32xf32>,
    return
  }
  func.func @transform_0(%arg0: i32) -> (i32, i32, i32) {
    %c0_i32 = arith.constant 0 : i32
    %c0_i32_0 = arith.constant 0 : i32
    %c0_i32_1 = arith.constant 0 : i32
    return %arg0, %c0_i32, %c0_i32_0 : i32, i32, i32
  }
  func.func @transform_1(%arg0: i32) -> (i32, i32) {
    %c0_i32 = arith.constant 0 : i32
    %c0_i32_0 = arith.constant 0 : i32
    %c0_i32_1 = arith.constant 0 : i32
    return %c0_i32, %c0_i32_0 : i32, i32
  }
  func.func @transform_2(%arg0: i32) -> (i32, i32) {
    %c0_i32 = arith.constant 0 : i32
    %c0_i32_0 = arith.constant 0 : i32
    %c0_i32_1 = arith.constant 0 : i32
    return %c0_i32, %c0_i32_0 : i32, i32
  }
  func.func @transform_3(%arg0: i32) -> (i32, i32) {
    %c0_i32 = arith.constant 0 : i32
    %c0_i32_0 = arith.constant 0 : i32
    %c0_i32_1 = arith.constant 0 : i32
    return %c0_i32, %c0_i32_0 : i32, i32
  }
  func.func @transform_4(%arg0: i32) -> (i32, i32) {
    %c0_i32 = arith.constant 0 : i32
    %c0_i32_0 = arith.constant 0 : i32
    %c0_i32_1 = arith.constant 0 : i32
    return %c0_i32, %c0_i32_0 : i32, i32
  }
  func.func @transform_5(%arg0: i32) -> (i32, i32, i32) {
    %c0_i32 = arith.constant 0 : i32
    %c0_i32_0 = arith.constant 0 : i32
    %c0_i32_1 = arith.constant 0 : i32
    return %arg0, %c0_i32, %c0_i32_0 : i32, i32, i32
  }
}

</mosaic_0001>

<bundles_post_ra>
// kernel: tpu_custom_call.1
= control target key start
LH: loop header
LB: loop body
LE: loop exit
PB: predicated region body
PF: predicated region fallthrough
CT: control target
= control target key end

     0   :  { %10 = vsyncpa [#allocation4], 0  ;;  %s1201_s0 = inlined_call_operand.hbm [shape: f32[2,16,16], index: 0, kind: input, shape index: {}]   ;;  %s1202_s1 = inlined_call_operand.hbm [shape: f32[16,32], index: 1, kind: input, shape index: {}]   ;;  %s1203_s2 = inlined_call_operand.vmem [shape: f32[1,32], index: 2, kind: input, shape index: {}]   ;;  %s1204_s3 = inlined_call_operand.hbm [shape: f32[9,32], index: 3, kind: input, shape index: {}]   ;;  %s1205_s4 = inlined_call_operand.vmem [shape: f32[1,32], index: 4, kind: input, shape index: {}]   ;;  %s1206_s5 = inlined_call_operand.hbm [shape: f32[2,16,32], index: 5, kind: output, shape index: {}]  }
   0x1   :  { %12 = vsyncpa [#allocation4 + $0x1], 0 }
   0x2   :  { %13 = vsyncpa [#allocation7], 0 }
   0x3   :  { %14 = vsyncpa [#allocation5], 0 }
   0x4   :  { %16 = vsyncpa [#allocation5 + $0x1], 0  ;;  %s944_s18 = smov 0   ;;  %s946_s19 = smov 0  }
   0x5   :  { %s948_s20 = smov 0   ;;  %s950_s21 = smov 0  }
   0x6 LB: > { %s965_s22 = sadd.s32 4294967295, %s903_s21   ;;  %s623_s23 = sadd.s32 4294967294, %s903_s21   ;;  %s903_s21 = sphi %s950_s21, %s1226_s21   ;;  %s899_s20 = sphi %s948_s20, %s1225_s20   ;;  %s895_s19 = sphi %s946_s19, %s1224_s19   ;;  %s891_s18 = sphi %s944_s18, %s1223_s18  }
   0x7   : > { %p42_p0 = scmp.ne.s32.totalorder %s895_s19, %s891_s18  ;;  %p1207_p1 = scmp.eq.s32.totalorder %s965_s22, 0 }
   0x8   : > { %p156_p3 = scmp.eq.s32.totalorder %s623_s23, 1  ;;  %p624_p5 = scmp.ge.s32.totalorder %s903_s21, 1 }
   0x9   : > { %p974_p4 = por %p1207_p1, %p42_p0  ;;  %p163_p7 = scmp.lt.s32.totalorder %s903_s21, 3 }
   0xa   : > { %p979_p6 = por %p156_p3, %p42_p0  ;;  %s905_s27 = smov [#allocation6]  }
   0xb   : > { %s1210_s24 = scalar_select %p974_p4, 1, 0 }
   0xc   : > { %s1211_s25 = scalar_select %p979_p6, 1, 0 }
   0xd   : > { %p984_p8 = pnand %p624_p5, %p163_p7  ;;  %s175_s28 = sshll.u32 %s905_s27, 4  ;;  %s988_s28 = int_to_ptr.vmem [resolvable:$true] %s175_s28 }
   0xe   : > { %s906_s30 = smov [#allocation8]   ;;  %s747_s9 = scalar_lea.hbm %s1202_s1, 256 }
   0xf   : > { %p687_p9 = pneg %p984_p8  ;;  %s191_s6 = sshll.u32 %s906_s30, 4  ;;  %s999_s6 = int_to_ptr.vmem [resolvable:$true] %s191_s6 }
  0x10   : > { %p748_p12 = scmp.ne.s32.totalorder %s1202_s1, %s747_s9  ;;  %p754_p5 = scmp.lt.u32.totalorder %s747_s9, %s1202_s1 }
  0x11   : > { %p995_p11 = pnand %p687_p9, %p1207_p1 }
  0x13   : > { %p749_p13 = pneg %p995_p11 }
  0x15   : > { %p750_p0 = pnand %p749_p13, %p748_p12 }
  0x17   : > { %p751_p3 = pneg %p750_p0 }
  0x19   : > { %p756_p7 = pnand %p754_p5, %p751_p3 }
  0x1b   : > { %759 = shalt.err (!%p756_p7)
}
  0x1c   : > { %s760_s14 = scalar_lea.vmem %s988_s28, 256  ;;  %p768_p2 = scmp.lt.s32.totalorder %s988_s28, %s988_s28 }
  0x1d   : > { %p761_p9 = scmp.ne.s32.totalorder %s988_s28, %s760_s14  ;;  %p769_p12 = scmp.lt.s32.totalorder %s760_s14, %s760_s14 }
  0x1f   : > { %p763_p10 = pnand %p761_p9, %p749_p13  ;;  %p770_p0 = por %p769_p12, %p768_p2 }
  0x21   : > { %p764_p1 = pneg %p763_p10 }
  0x23   : > { %p771_p6 = pnand %p770_p0, %p764_p1 }
  0x25   : > { %774 = shalt.err (!%p771_p6)
}
  0x26   : > { %s907_s15 = smov 128   ;;  %s908_s16 = smov 8  }
  0x27   : > { %690 = dma.hbm_to_vmem [thread:$0]  (!%p995_p11), %s1202_s1, 256, %s988_s28, [#allocation7], %s907_s15, %s907_s15, %s908_s16  }
  0x28   : > { %s775_s7 = scalar_lea.hbm %s1204_s3, 256 }
  0x29   : > { %p776_p1 = scmp.ne.s32.totalorder %s1204_s3, %s775_s7  ;;  %p782_p10 = scmp.lt.u32.totalorder %s775_s7, %s1204_s3 }
  0x2b   : > { %p778_p2 = pnand %p776_p1, %p749_p13 }
  0x2d   : > { %p779_p6 = pneg %p778_p2 }
  0x2f   : > { %p784_p3 = pnand %p782_p10, %p779_p6 }
  0x31   : > { %787 = shalt.err (!%p784_p3)
}
  0x32   : > { %s788_s28 = scalar_lea.vmem %s999_s6, 256  ;;  %p796_p12 = scmp.lt.s32.totalorder %s999_s6, %s999_s6 }
  0x33   : > { %p789_p5 = scmp.ne.s32.totalorder %s999_s6, %s788_s28  ;;  %p797_p0 = scmp.lt.s32.totalorder %s788_s28, %s788_s28 }
  0x35   : > { %p791_p7 = pnand %p789_p5, %p749_p13  ;;  %p798_p1 = por %p797_p0, %p796_p12 }
  0x37   : > { %p792_p9 = pneg %p791_p7 }
  0x39   : > { %p799_p2 = pnand %p798_p1, %p792_p9 }
  0x3b   : > { %802 = shalt.err (!%p799_p2)
}
  0x3c   : > { %693 = dma.hbm_to_vmem [thread:$0]  (!%p995_p11), %s1204_s3, 256, %s999_s6, [#allocation7], %s907_s15, %s907_s15, %s908_s16  }
  0x3d   : > { %s1060_s29 = sadd.s32 1, %s903_s21   ;;  %s29_s14 = sadd.s32 1, %s899_s20 }
  0x3e   : > { %s26_s17 = ssub.s32 %s903_s21, %s1060_s29  ;;  %p36_p13 = scmp.ne.s32.totalorder %s899_s20, %s895_s19 }
  0x3f   : > { %p27_p6 = scmp.eq.s32.totalorder %s26_s17, 0  ;;  %p37_p10 = scmp.eq.s32.totalorder %s903_s21, 0 }
  0x40   : > { %p1214_p3 = scmp.eq.s32.totalorder %s965_s22, 1  ;;  %p704_p7 = scmp.lt.s32.totalorder %s903_s21, 2 }
  0x41   : > { %s1076_s27 = scalar_select %p27_p6, %s899_s20, %s29_s14  }
  0x42   : > { %p1070_p5 = por %p1214_p3, %p36_p13  ;;  %p38_p9 = por %p37_p10, %p36_p13 }
  0x43   : > { %s208_s30 = sand.u32 1, %s899_s20   ;;  %s658_s6 = sshll.u32 %s903_s21, 8 }
  0x44   : > { %s1215_s23 = scalar_select %p1070_p5, 1, 0 }
  0x45   : > { %s628_s7 = sshll.u32 %s208_s30, 4  ;;  %s1083_s10 = scalar_lea.hbm %s1201_s0, %s658_s6 }
  0x46   : > { %s212_s11 = scalar_lea.vmem [#allocation3], %s628_s7  ;;  %p1087_p11 = pnand %p704_p7, %p38_p9 }
  0x47   : > { %s219_s28 = sshll.u32 %s212_s11, 4  ;;  %s1091_s13 = scalar_lea.sflag [#allocation4], %s208_s30  ;;  %s1085_s28 = int_to_ptr.vmem [resolvable:$true] %s219_s28 }
  0x48   : > { %s803_s14 = scalar_lea.hbm %s1083_s10, 256  ;;  %p805_p0 = pneg %p1087_p11 }
  0x49   : > { %p804_p12 = scmp.ne.s32.totalorder %s1083_s10, %s803_s14  ;;  %s808_s6 = scalar_lea.hbm %s1201_s0, 512 }
  0x4a   : > { %p809_p13 = scmp.lt.u32.totalorder %s1083_s10, %s1201_s0  ;;  %p810_p6 = scmp.lt.u32.totalorder %s808_s6, %s803_s14 }
  0x4b   : > { %p806_p1 = pnand %p805_p0, %p804_p12  ;;  %p812_p3 = scmp.lt.u32.totalorder %s803_s14, %s1083_s10 }
  0x4c   : > { %p811_p10 = por %p810_p6, %p809_p13 }
  0x4d   : > { %p807_p2 = pneg %p806_p1 }
  0x4e   : > { %p813_p7 = por %p812_p3, %p811_p10 }
  0x50   : > { %p814_p9 = pnand %p813_p7, %p807_p2 }
  0x52   : > { %817 = shalt.err (!%p814_p9)
}
  0x53   : > { %s818_s30 = scalar_lea.vmem %s1085_s28, 256  ;;  %s909_s11 = smov [#allocation3]  }
  0x54   : > { %p819_p12 = scmp.ne.s32.totalorder %s1085_s28, %s818_s30  ;;  %s823_s17 = sshll.u32 %s909_s11, 4  ;;  %s824_s17 = int_to_ptr.vmem [resolvable:$false] %s823_s17 }
  0x55   : > { %s825_s7 = scalar_lea.vmem %s824_s17, 512  ;;  %p826_p4 = scmp.lt.s32.totalorder %s1085_s28, %s824_s17 }
  0x56   : > { %p821_p1 = pnand %p819_p12, %p805_p0  ;;  %p827_p13 = scmp.lt.s32.totalorder %s825_s7, %s818_s30 }
  0x58   : > { %p822_p5 = pneg %p821_p1  ;;  %p828_p6 = por %p827_p13, %p826_p4 }
  0x5a   : > { %p829_p10 = pnand %p828_p6, %p822_p5 }
  0x5c   : > { %832 = shalt.err (!%p829_p10)
}
  0x5d   : > { %697 = dma.hbm_to_vmem [thread:$0]  (!%p1087_p11), %s1083_s10, 256, %s1085_s28, %s1091_s13, %s907_s15, %s907_s15, %s908_s16  }
  0x5e   : > { %231 = sbr.rel (%p984_p8) target bundleno = 372 (0x174), region = 40  ;;  %s1125_s14 = sand.u32 (!%p984_p8), 1, %s895_s19  }
  0x5f   : > { %s632_s6 = sshll.u32 (!%p984_p8), %s1125_s14, 4  ;;  %s234_s8 = scalar_lea.sflag (!%p984_p8), [#allocation4], %s1125_s14 }
  0x60   : > { %s237_s12 = scalar_lea.vmem (!%p984_p8), [#allocation3], %s632_s6  ;;  %p1217_p4 = scmp.ne.s32.totalorder (!%p984_p8), %s1210_s24, 0 }
  0x65   : > { %878 = dma.done.wait (%p1217_p4), %s234_s8, 256  }
  0x66   : > { %880 = vsyncadd (%p1217_p4), %s234_s8, 4294967040  ;;  %p1218_p5 = scmp.eq.s32.totalorder %s965_s22, 0 }
  0x68   : > { %882 = dma.done.wait (%p1218_p5), [#allocation7], 512   ;;  %p1219_p8 = pmov %p1218_p5 }
  0x69   : > { %vm283_vm0 = vcmask 130048   ;;  %v274_v0 = vld [vmem:[#allocation6] sm:$0xff]  ;;  %v275_v1 = vld [vmem:[#allocation6 + $0x8] sm:$0xff]  ;;  %vm365_vm1 = vcmask 258048   ;;  %v910_v5 = vmov 0.0   ;;  %v371_v6 = vlaneseq  ;;  %s659_s10 = sshll.u32 %s965_s22, 8 }
  0x6a   : > { %884 = vsyncadd (%p1219_p8), [#allocation7], 4294966784  ;;  %v272_v2 = vld [vmem:[%s237_s12] sm:$0xff]  ;;  %v671_v3 = vpack.c.bf16 %v275_v1, %v274_v0  ;;  %v273_v4 = vld [vmem:[%s237_s12 + $0x8] sm:$0xff]  ;;  %366 = vst.msk [vmem:[#allocation2] sm:$0x1f] %vm365_vm1, %v910_v5  ;;  %s1153_s11 = scalar_lea.hbm %s1206_s5, %s659_s10 }
  0x6b   : > { %668 = vmatprep.mubr.msk.f32.mxu0 %vm283_vm0, %v272_v2  ;;  %367 = vst.msk [vmem:[#allocation2 + $0x15] sm:$0x1f] %vm365_vm1, %v910_v5  ;;  %v372_v7 = vshrl.u32 %v371_v6, 7  ;;  %v636_v8 = vld [vmem:[%s1203_s2] ss:$0 sm:$0xff]  ;;  %vm368_vm2 = vcmask 261120  }
  0x6c   : > { %672 = vmatprep.subr.bf16.mxu0 %v671_v3  ;;  %v644_v16 = vld [vmem:[#allocation8] ss:$0 sm:$0xff]  ;;  %v645_v17 = vld [vmem:[#allocation8 + $0x1] ss:$0 sm:$0xff]  ;;  %v646_v18 = vld [vmem:[#allocation8 + $0x2] ss:$0 sm:$0xff] }
  0x6d   : > { %674 = vmatpush3.bf16.msra.mxu0 %v671_v3  ;;  %v373_v10 = vadd.s32 8, %v372_v7  ;;  %v378_v14 = vand.u32 3, %v372_v7  ;;  %v643_v21 = vld [vmem:[%s1205_s4] ss:$0 sm:$0xff]  ;;  %v647_v32 = vld [vmem:[#allocation8 + $0x3] ss:$0 sm:$0xff] }
  0x6e   : > { %v649_v47 = vld [vmem:[#allocation8 + $0x5] ss:$0 sm:$0xff]  ;;  %v650_v53 = vld [vmem:[#allocation8 + $0x6] ss:$0 sm:$0xff]  ;;  %v648_v56 = vld [vmem:[#allocation8 + $0x4] ss:$0 sm:$0xff] }
  0x6f   : > { %v385_v15 = vand.u32 3, %v373_v10  ;;  %vm388_vm3 = vcmp.gt.s32.totalorder %v378_v14, 0  ;;  %vm394_vm5 = vcmp.lt.s32.totalorder %v378_v14, 3  ;;  %v652_v6 = vld [vmem:[#allocation8 + $0x8] ss:$0 sm:$0xff]  ;;  %s271_s28 = scalar_lea.vmem [#allocation9], %s632_s6 }
  0x70   : > { %669 = vmatmul.mubr.msk.f32.vlgmr.msra.gmra.mrb[0].mxu0 %vm283_vm0, %v273_v4  ;;  %v639_v19 = vsel %vm388_vm3, 1.0, %v910_v5  ;;  %v641_v37 = vsel %vm394_vm5, 1.0, %v910_v5  ;;  %v651_v14 = vld [vmem:[#allocation8 + $0x7] ss:$0 sm:$0xff]  ;;  %s531_s13 = sshll.u32 %s271_s28, 4  ;;  %s518_s22 = scalar_lea.sflag [#allocation5], %s1125_s14  ;;  %s1155_s13 = int_to_ptr.vmem [resolvable:$true] %s531_s13 }
  0x71   : > { %vm389_vm4 = vcmp.gt.s32.totalorder %v385_v15, 0  ;;  %vm395_vm6 = vcmp.lt.s32.totalorder %v385_v15, 3  ;;  %s833_s17 = scalar_lea.vmem %s1155_s13, 256  ;;  %p1220_p0 = scmp.ne.s32.totalorder %s1215_s23, 0 }
  0x72   : > { %v640_v20 = vsel %vm389_vm4, 1.0, %v910_v5  ;;  %v642_v38 = vsel %vm395_vm6, 1.0, %v910_v5  ;;  %p834_p11 = scmp.ne.s32.totalorder %s1155_s13, %s833_s17  ;;  %s911_s7 = smov [#allocation9]  }
  0x73   : > { %s837_s6 = sshll.u32 %s911_s7, 4  ;;  %s838_s6 = int_to_ptr.vmem [resolvable:$false] %s837_s6 }
  0x74   : > { %p835_p2 = pnand %p834_p11, %p1220_p0  ;;  %s839_s8 = scalar_lea.vmem %s838_s6, 512 }
  0x75   : > { %p840_p7 = scmp.lt.s32.totalorder %s1155_s13, %s838_s6  ;;  %p841_p9 = scmp.lt.s32.totalorder %s839_s8, %s833_s17 }
  0x76   : > { %p836_p3 = pneg %p835_p2 }
  0x77   : > { %p842_p12 = por %p841_p9, %p840_p7 }
  0x79   : > { %p843_p1 = pnand %p842_p12, %p836_p3 }
 0x143   : > { %v670_v9 = vpop.f32.mrb[0].mxu0 }
 0x144   : > { %v362_v11 = vadd.f32 %v670_v9, %v636_v8  ;;  %v356_v12 = vpop.f32.mrb[1].mxu0 }
 0x145   : > { %v357_v13 = vadd.f32 %v636_v8, %v356_v12 }
 0x146   : > { %370 = vst.msk [vmem:[#allocation2 + $0xd] sm:$0xff] %vm368_vm2, %v362_v11 }
 0x147   : > { %369 = vst.msk [vmem:[#allocation2 + $0x5] sm:$0xff] %vm368_vm2, %v357_v13 }
 0x14d   : > { %v469_v46 = vld [vmem:[#allocation2 + $0xe] sm:$0xff] }
 0x14e   : > { %v407_v22 = vld [vmem:[#allocation2] sm:$0xff]  ;;  %v408_v23 = vld [vmem:[#allocation2 + $0x8] sm:$0xff]  ;;  %v481_v52 = vld [vmem:[#allocation2 + $0x10] sm:$0xff]  ;;  %v476_v58 = vmul.f32 %v649_v47, %v469_v46 }
 0x14f   : > { %v420_v24 = vld [vmem:[#allocation2 + $0x1] sm:$0xff]  ;;  %v414_v25 = vmul.f32 %v644_v16, %v407_v22  ;;  %v415_v26 = vmul.f32 %v644_v16, %v408_v23  ;;  %v421_v27 = vld [vmem:[#allocation2 + $0x9] sm:$0xff]  ;;  %v487_v63 = vmul.f32 %v650_v53, %v408_v23  ;;  %v488_v0 = vmul.f32 %v650_v53, %v481_v52  ;;  %v503_v5 = vld [vmem:[#allocation2 + $0x12] sm:$0xff] }
 0x150   : > { %v431_v28 = vld [vmem:[#allocation2 + $0x2] sm:$0xff]  ;;  %v432_v29 = vld [vmem:[#allocation2 + $0xa] sm:$0xff]  ;;  %v427_v39 = vmul.f32 %v645_v17, %v420_v24  ;;  %v428_v40 = vmul.f32 %v645_v17, %v421_v27  ;;  %v478_v10 = vmul.f32 %v642_v38, %v476_v58  ;;  %v499_v23 = vmul.f32 %v651_v14, %v421_v27 }
 0x151   : > { %v444_v30 = vld [vmem:[#allocation2 + $0x4] sm:$0xff]  ;;  %v445_v31 = vld [vmem:[#allocation2 + $0xc] sm:$0xff]  ;;  %v416_v33 = vmul.f32 %v639_v19, %v414_v25  ;;  %v417_v34 = vmul.f32 %v640_v20, %v415_v26  ;;  %v438_v35 = vmul.f32 %v646_v18, %v431_v28  ;;  %v439_v36 = vmul.f32 %v646_v18, %v432_v29 }
 0x152   : > { %v451_v43 = vmul.f32 %v647_v32, %v444_v30  ;;  %v452_v44 = vmul.f32 %v647_v32, %v445_v31  ;;  %v468_v45 = vld [vmem:[#allocation2 + $0x6] sm:$0xff]  ;;  %v489_v11 = vmul.f32 %v639_v19, %v487_v63  ;;  %v490_v12 = vmul.f32 %v640_v20, %v488_v0  ;;  %v493_v13 = vld [vmem:[#allocation2 + $0x11] sm:$0xff] }
 0x153   : > { %v418_v41 = vadd.f32 %v643_v21, %v416_v33  ;;  %v419_v42 = vadd.f32 %v643_v21, %v417_v34  ;;  %v440_v50 = vmul.f32 %v641_v37, %v438_v35  ;;  %v441_v51 = vmul.f32 %v642_v38, %v439_v36  ;;  %v457_v54 = vld [vmem:[#allocation2 + $0x5] sm:$0xff]  ;;  %v458_v55 = vld [vmem:[#allocation2 + $0xd] sm:$0xff] }
 0x154   : > { %v475_v57 = vmul.f32 %v649_v47, %v468_v45  ;;  %v453_v61 = vmul.f32 %v639_v19, %v451_v43  ;;  %v454_v62 = vmul.f32 %v640_v20, %v452_v44  ;;  %v464_v3 = vmul.f32 %v648_v56, %v457_v54 }
 0x155   : > { %v429_v48 = vadd.f32 %v427_v39, %v418_v41  ;;  %v430_v49 = vadd.f32 %v428_v40, %v419_v42  ;;  %v465_v4 = vmul.f32 %v648_v56, %v458_v55  ;;  %v509_v17 = vmul.f32 %v652_v6, %v432_v29 }
 0x156   : > { %v477_v9 = vmul.f32 %v641_v37, %v475_v57  ;;  %v510_v18 = vmul.f32 %v652_v6, %v503_v5  ;;  %v500_v24 = vmul.f32 %v651_v14, %v493_v13 }
 0x157   : > { %v442_v59 = vadd.f32 %v440_v50, %v429_v48  ;;  %v443_v60 = vadd.f32 %v441_v51, %v430_v49  ;;  %v511_v19 = vmul.f32 %v641_v37, %v509_v17 }
 0x158   : > { %v512_v20 = vmul.f32 %v642_v38, %v510_v18 }
 0x159   : > { %v455_v1 = vadd.f32 %v453_v61, %v442_v59  ;;  %v456_v2 = vadd.f32 %v454_v62, %v443_v60 }
 0x15b   : > { %v466_v7 = vadd.f32 %v464_v3, %v455_v1  ;;  %v467_v8 = vadd.f32 %v465_v4, %v456_v2 }
 0x15d   : > { %v479_v15 = vadd.f32 %v477_v9, %v466_v7  ;;  %v480_v16 = vadd.f32 %v478_v10, %v467_v8 }
 0x15f   : > { %v491_v21 = vadd.f32 %v489_v11, %v479_v15  ;;  %v492_v22 = vadd.f32 %v490_v12, %v480_v16 }
 0x161   : > { %v501_v25 = vadd.f32 %v499_v23, %v491_v21  ;;  %v502_v26 = vadd.f32 %v500_v24, %v492_v22 }
 0x163   : > { %v513_v27 = vadd.f32 %v511_v19, %v501_v25  ;;  %v514_v28 = vadd.f32 %v512_v20, %v502_v26 }
 0x165   : > { %515 = vst.msk [vmem:[%s271_s28] sm:$0xff] %vm368_vm2, %v513_v27  ;;  %516 = vst.msk [vmem:[%s271_s28 + $0x8] sm:$0xff] %vm368_vm2, %v514_v28 }
 0x166   : > { %846 = shalt.err (!%p843_p1)
}
 0x167   : > { %s847_s12 = scalar_lea.hbm %s1153_s11, 256  ;;  %s851_s15 = scalar_lea.hbm %s1206_s5, 512 }
 0x168   : > { %p848_p13 = scmp.ne.s32.totalorder %s1153_s11, %s847_s12  ;;  %p852_p4 = scmp.lt.u32.totalorder %s1153_s11, %s1206_s5 }
 0x169   : > { %p853_p5 = scmp.lt.u32.totalorder %s851_s15, %s847_s12  ;;  %p855_p11 = scmp.lt.u32.totalorder %s847_s12, %s1153_s11 }
 0x16a   : > { %p849_p6 = pnand %p848_p13, %p1220_p0 }
 0x16b   : > { %p854_p8 = por %p853_p5, %p852_p4 }
 0x16c   : > { %p850_p10 = pneg %p849_p6 }
 0x16d   : > { %p856_p2 = por %p855_p11, %p854_p8 }
 0x16f   : > { %p857_p3 = pnand %p856_p2, %p850_p10 }
 0x171   : > { %860 = shalt.err (!%p857_p3)
}
 0x172   : > { %s912_s28 = smov 128   ;;  %s913_s9 = smov 8  }
 0x173   : > { %685 = dma.vmem_to_hbm [thread:$0]  (%p1220_p0), %s1155_s13, 256, %s1153_s11, %s518_s22, %s912_s28, %s912_s28, %s913_s9  }
 0x174 PF: > { %s546_s30 = sand.u32 1, %s891_s18   ;;  %p1221_p7 = scmp.ne.s32.totalorder %s1211_s25, 0 }
 0x175   : > { %p1222_p9 = scmp.ge.s32.totalorder %s903_s21, 2  ;;  %s547_s17 = scalar_lea.sflag [#allocation5], %s546_s30 }
 0x177   : > { %p699_p12 = pnand %p1222_p9, %p1221_p7 }
 0x179   : > { %886 = dma.done.wait (!%p699_p12), %s547_s17, 256  }
 0x17a   : > { %888 = vsyncadd (!%p699_p12), %s547_s17, 4294967040  ;;  %p19_p1 = scmp.ge.s32.totalorder %s1060_s29, 4   ;;  %s1223_s18 = smov %s895_s19 }
 0x17b   : > { %s1224_s19 = smov %s899_s20  ;;  %s1225_s20 = smov %s1076_s27 }
 0x17c   : > { %s1226_s21 = smov %s1060_s29  ;;  %21 = sbr.rel (!%p19_p1) target bundleno = 6 (0x6), region = 93 }
 0x183   :  { %552 = vsyncpa [#allocation4], 1 }
 0x184   :  { %554 = vsyncpa [#allocation4 + $0x1], 1 }
 0x185   :  { %555 = vsyncpa [#allocation7], 1 }
 0x186   :  { %556 = vsyncpa [#allocation5], 1 }
 0x187   :  { %558 = vsyncpa [#allocation5 + $0x1], 1 }

</bundles_post_ra>
